<compile_context>
chip_gen: v5e
topology: v5e:2x2
jax: 0.10.0
libtpu: 0.0.40
codegen_flags: <defaults>
</compile_context>

<pallas_src>
import functools

import numpy as np
import jax
import jax.numpy as jnp
from jax import lax
from jax.experimental import pallas as pl
from jax.experimental.pallas import tpu as pltpu


def _cdiv(a, b):
    return (a + b - 1) // b


def make_downsample_taps(factor=2, order=1):
    """The 1D anti-aliasing kernel built in Downsample.__init__ (length K)."""
    box = np.ones(factor)
    k = np.ones(factor)
    for _ in range(order):
        k = np.convolve(k, box)
    return k / np.sum(k)


def _band_matrix(n_rows, n_cols, col_offset, taps, stride, pad, dtype):
    """S[q, r] = taps[q + col_offset + pad - r*stride] inside the band, else 0.

    Multiplying an input window whose column q sits `col_offset + q` elements
    to the right of an output tile's first element * stride gives that
    window's contribution to the depthwise FIR for output columns [0, n_cols).
    The conv's zero padding is handled implicitly (taps that fall outside the
    window simply have no row).
    """
    q = np.arange(n_rows)[:, None]
    r = np.arange(n_cols)[None, :]
    k = q + col_offset + pad - r * stride
    K = taps.shape[0]
    valid = (k >= 0) & (k < K)
    S = np.where(valid, np.asarray(taps)[np.clip(k, 0, K - 1)], 0.0)
    return jnp.asarray(S, dtype=dtype)


# --------------------------- kernels ---------------------------------------


def _single_tile_kernel(x_ref, s_ref, o_ref, *, precision):
    # Whole sequence in one tile: out = x @ S (padding folded into S).
    o_ref[...] = jnp.dot(
        x_ref[...], s_ref[...],
        preferred_element_type=jnp.float32,
        precision=precision).astype(o_ref.dtype)


def _tiled_kernel(x_ref, sm_ref, o_ref, *, L, Ts, precision, mask_main):
    # pad == 0: every output column only needs its aligned main input block.
    j = pl.program_id(1)
    xm = x_ref[...]
    if mask_main:  # NaN-safe zeroing of the unfetched tail of a partial block
        col = lax.broadcasted_iota(jnp.int32, (1, Ts), 1) + j * Ts
        xm = jnp.where(col < L, xm, jnp.zeros_like(xm))
    o_ref[...] = jnp.dot(
        xm, sm_ref[...], preferred_element_type=jnp.float32,
        precision=precision).astype(o_ref.dtype)


def _tiled_halo_kernel(x_ref, hb_ref, ha_ref, sm_ref, shb_ref, sha_ref, o_ref,
                       *, L, Ts, precision, mask_main):
    j = pl.program_id(1)

    # Main (aligned) input block.
    xm = x_ref[...]
    if mask_main:
        col = lax.broadcasted_iota(jnp.int32, (1, Ts), 1) + j * Ts
        xm = jnp.where(col < L, xm, jnp.zeros_like(xm))
    acc = jnp.dot(xm, sm_ref[...], preferred_element_type=jnp.float32,
                  precision=precision)

    # Left halo: last `pad` columns of the 128-chunk just before this tile.
    # For j == 0 those columns are the conv's left zero padding -> gated off
    # (the fetched block index was clamped and holds unrelated data).
    hb = jnp.dot(hb_ref[...], shb_ref[...], preferred_element_type=jnp.float32,
                 precision=precision)
    acc = acc + jnp.where(j > 0, hb, 0.0)

    # Right halo: first `pad` columns of the 128-chunk just after this tile.
    # Columns >= L are the conv's right zero padding (or unfetched garbage in
    # a partial block) -> masked to 0; if the whole chunk starts at/after L
    # the contribution is gated off entirely.
    ha_in = ha_ref[...]
    col = lax.broadcasted_iota(jnp.int32, (1, 128), 1) + (j + 1) * Ts
    ha_in = jnp.where(col < L, ha_in, jnp.zeros_like(ha_in))
    ha = jnp.dot(ha_in, sha_ref[...], preferred_element_type=jnp.float32,
                 precision=precision)
    acc = acc + jnp.where((j + 1) * Ts < L, ha, 0.0)

    o_ref[...] = acc.astype(o_ref.dtype)


# --------------------------- wrapper ----------------------------------------


def downsample(x, factor=2, order=1, *, nc_tile=256, t_out_tile=512):
    """Anti-aliased 1D downsampling, identical to Downsample.forward.

    x: (N, C, L) -> (N, C, L_out)   (depthwise conv1d, stride=factor).
    """
    N, C, L = x.shape
    s = int(factor)
    assert s > 1, "Downsampling factor must be > 1"
    total_padding = order * (s - 1)
    assert total_padding % 2 == 0, "order*(factor-1) must be even"
    pad = total_padding // 2

    taps = make_downsample_taps(s, order)
    K = int(taps.shape[0])
    L_out = (L + 2 * pad - K) // s + 1
    assert L_out >= 1

    NC = N * C
    dtype = x.dtype
    itemsize = jnp.dtype(dtype).itemsize

    # bf16 stays bf16 end to end (native MXU, f32 accumulate).  Other dtypes
    # run against an f32 band matrix at HIGHEST precision; since only K taps
    # per output column are non-zero this matches an exact f32 FIR to ~1e-7.
    if dtype == jnp.bfloat16:
        s_dtype = jnp.bfloat16
        precision = None
    else:
        s_dtype = jnp.float32
        precision = lax.Precision.HIGHEST
    s_itemsize = jnp.dtype(s_dtype).itemsize

    # ---- row (N*C) tiling: rows on sublanes, time stays on lanes ----------
    if NC <= nc_tile:
        NC_T = NC                                 # full extent (always legal)
    else:
        NC_T = max(8, (min(nc_tile, NC) // 8) * 8)
    n_i = _cdiv(NC, NC_T)

    # ---- time tiling -------------------------------------------------------
    T_OUT = max(128, (int(t_out_tile) // 128) * 128)
    tiled = L_out > T_OUT

    try:
        vmem_cap = int(pltpu.get_tpu_info().vmem_capacity_bytes)
    except Exception:
        vmem_cap = 64 * 1024 * 1024               # v7x-safe fallback
    budget = int(0.45 * vmem_cap)

    xr = x.reshape(NC, L)                         # free reshape
    out_shape = jax.ShapeDtypeStruct((NC, L_out), dtype)

    if not tiled:
        # Whole sequence in one time tile (small L): out = x @ S.
        S = _band_matrix(L, L_out, 0, taps, s, pad, s_dtype)
        est = 2 * NC_T * (L + L_out) * itemsize + 2 * L * L_out * s_itemsize
        vmem_limit = int(min(max(2 * est, 32 << 20), int(0.9 * vmem_cap)))
        kern = functools.partial(_single_tile_kernel, precision=precision)
        out = pl.pallas_call(
            kern,
            out_shape=out_shape,
            grid=(n_i,),
            in_specs=[pl.BlockSpec((NC_T, L), lambda i: (i, 0)),
                      pl.BlockSpec((L, L_out), lambda i: (0, 0))],
            out_specs=pl.BlockSpec((NC_T, L_out), lambda i: (i, 0)),
            compiler_params=pltpu.CompilerParams(
                dimension_semantics=("parallel",),
                vmem_limit_bytes=vmem_limit),
            cost_estimate=pl.CostEstimate(
                flops=2 * NC * L * L_out,
                transcendentals=0,
                bytes_accessed=NC * (L + L_out) * itemsize
                + L * L_out * s_itemsize),
        )(xr, S)
        return out.reshape(N, C, L_out)

    # ---- halo'd time tiling (long sequences) -------------------------------
    assert pad <= 128, "halo wider than one 128-lane chunk is not supported"

    def footprint(t_out):
        ts = t_out * s
        b = 2 * NC_T * ts * itemsize              # main input (double buffer)
        b += 2 * NC_T * t_out * itemsize          # output     (double buffer)
        b += 2 * ts * t_out * s_itemsize          # S_main
        if pad > 0:
            b += 2 * 2 * NC_T * 128 * itemsize    # the two halo chunks
            b += 2 * 2 * 128 * t_out * s_itemsize
        return b

    while T_OUT > 128 and footprint(T_OUT) > budget:
        T_OUT //= 2

    Ts = T_OUT * s                                # main input block width
    n_t = _cdiv(L_out, T_OUT)
    nHB = Ts // 128                               # main block width in chunks
    n128 = _cdiv(L, 128)
    mask_main = (n_t * Ts) > L                    # last main block is partial

    vmem_limit = int(min(max(2 * footprint(T_OUT), 32 << 20),
                         int(0.9 * vmem_cap)))
    cost = pl.CostEstimate(
        flops=2 * NC * L_out * (Ts + (256 if pad > 0 else 0)),
        transcendentals=0,
        bytes_accessed=NC * (L + L_out) * itemsize)

    S_main = _band_matrix(Ts, T_OUT, 0, taps, s, pad, s_dtype)

    if pad > 0:
        S_hb = _band_matrix(128, T_OUT, -128, taps, s, pad, s_dtype)
        S_ha = _band_matrix(128, T_OUT, Ts, taps, s, pad, s_dtype)
        kern = functools.partial(_tiled_halo_kernel, L=L, Ts=Ts,
                                 precision=precision, mask_main=mask_main)
        in_specs = [
            pl.BlockSpec((NC_T, Ts), lambda i, j: (i, j)),
            pl.BlockSpec((NC_T, 128),
                         lambda i, j: (i, jnp.maximum(j * nHB - 1, 0))),
            pl.BlockSpec((NC_T, 128),
                         lambda i, j: (i, jnp.minimum((j + 1) * nHB,
                                                      n128 - 1))),
            pl.BlockSpec((Ts, T_OUT), lambda i, j: (0, 0)),
            pl.BlockSpec((128, T_OUT), lambda i, j: (0, 0)),
            pl.BlockSpec((128, T_OUT), lambda i, j: (0, 0)),
        ]
        args = (xr, xr, xr, S_main, S_hb, S_ha)
    else:
        kern = functools.partial(_tiled_kernel, L=L, Ts=Ts,
                                 precision=precision, mask_main=mask_main)
        in_specs = [
            pl.BlockSpec((NC_T, Ts), lambda i, j: (i, j)),
            pl.BlockSpec((Ts, T_OUT), lambda i, j: (0, 0)),
        ]
        args = (xr, S_main)

    out = pl.pallas_call(
        kern,
        out_shape=out_shape,
        grid=(n_i, n_t),
        in_specs=in_specs,
        out_specs=pl.BlockSpec((NC_T, T_OUT), lambda i, j: (i, j)),
        compiler_params=pltpu.CompilerParams(
            dimension_semantics=("parallel", "parallel"),
            vmem_limit_bytes=vmem_limit),
        cost_estimate=cost,
    )(*args)
    return out.reshape(N, C, L_out)


# --------------------------- self-test ---------------------------------------


def _reference(x, factor, order):
    taps = make_downsample_taps(factor, order)
    C = x.shape[1]
    w_c = jnp.asarray(np.tile(taps[None, :], (C, 1)), dtype=jnp.float32)
    pad = (order * (factor - 1)) // 2
    return lax.conv_general_dilated(
        x, w_c[:, None, :],                       # (C, 1, K) == (O, I/g, W)
        window_strides=(factor,), padding=[(pad, pad)],
        dimension_numbers=("NCH", "OIH", "NCH"), feature_group_count=C)


if __name__ == "__main__":
    key = jax.random.PRNGKey(0)
    k1, k2 = jax.random.split(key)

    # 1) Module-sized example (single-time-tile path).
    x_small = jax.random.normal(k1, (2, 4, 16), dtype=jnp.float32)
    # 2) Longer sequence with deliberately small tiles to exercise the halo'd
    #    time-tiled path (partial NC block, partial time blocks, halo gating).
    x_long = jax.random.normal(k2, (2, 5, 333), dtype=jnp.float32)

    cases = [
        (x_small, 2, 2, {}),
        (x_small, 3, 1, {}),
        (x_small, 2, 0, {}),
        (x_long, 2, 2, dict(nc_tile=8, t_out_tile=128)),
        (x_long, 2, 0, dict(nc_tile=8, t_out_tile=128)),
    ]

    for xin, factor, order, kw in cases:
        out = jax.block_until_ready(
            downsample(xin, factor=factor, order=order, **kw))
        ref = _reference(xin, factor, order)
        assert out.shape == ref.shape, (factor, order, out.shape, ref.shape)
        max_err = float(jnp.max(jnp.abs(out - ref)))
        assert jnp.allclose(out, ref, atol=1e-4, rtol=1e-4), (
            f"mismatch vs reference conv: factor={factor} order={order} "
            f"shape={xin.shape} max_err={max_err}")

    print("KERNEL_OK")
</pallas_src>

<mosaic_0001>
module attributes {stable_mosaic.version = 11 : i64} {
  func.func @_single_tile_kernel(%arg0: i32, %arg1: memref<8x16xf32, #tpu.memory_space<vmem>>, %arg2: memref<16x8xf32, #tpu.memory_space<vmem>>, %arg3: memref<8x8xf32, #tpu.memory_space<vmem>>) attributes {dimension_semantics = [#tpu.dimension_semantics<parallel>], iteration_bounds = array<i64: 1>, scalar_prefetch = 0 : i64, scratch_operands = 0 : i64, tpu.core_type = #tpu.core_type<tc>, window_params = [{transform_indices = @transform_0, window_bounds = array<i64: 8, 16>}, {pipeline_mode = #tpu.pipeline_mode<synchronous>, transform_indices = @transform_1, window_bounds = array<i64: 16, 8>}, {transform_indices = @transform_2, window_bounds = array<i64: 8, 8>}]} {
    %c0 = arith.constant 0 : index
    %c0_0 = arith.constant 0 : index
    %0 = vector.load %arg1[%c0, %c0_0] : memref<8x16xf32, #tpu.memory_space<vmem>>, vector<8x16xf32>
    %c0_1 = arith.constant 0 : index
    %c0_2 = arith.constant 0 : index
    %1 = vector.load %arg2[%c0_1, %c0_2] : memref<16x8xf32, #tpu.memory_space<vmem>>, vector<16x8xf32>
    %cst = arith.constant dense<0.000000e+00> : vector<8x8xf32>
    %2 = tpu.matmul %0, %1, %cst {dimension_numbers = #tpu.dot_dimension_numbers<[1], [0], [0], [1], [0, 0, 1, 1], [], []>, precision = #tpu.contract_precision<fp32>} : vector<8x16xf32>, vector<16x8xf32>, vector<8x8xf32> -> vector<8x8xf32>
    %c0_3 = arith.constant 0 : index
    %c0_4 = arith.constant 0 : index
    %3 = vector.load %arg3[%c0_3, %c0_4] : memref<8x8xf32, #tpu.memory_space<vmem>>, vector<8x8xf32>
    tpu.vector_store %arg3[%c0_3, %c0_4], %2 {strides = array<i32>} : memref<8x8xf32, #tpu.memory_space<vmem>>, vector<8x8xf32>,
    return
  }
  func.func @transform_0(%arg0: i32) -> (i32, i32) {
    %c0_i32 = arith.constant 0 : i32
    %c0_i32_0 = arith.constant 0 : i32
    return %arg0, %c0_i32 : i32, i32
  }
  func.func @transform_1(%arg0: i32) -> (i32, i32) {
    %c0_i32 = arith.constant 0 : i32
    %c0_i32_0 = arith.constant 0 : i32
    %c0_i32_1 = arith.constant 0 : i32
    return %c0_i32, %c0_i32_0 : i32, i32
  }
  func.func @transform_2(%arg0: i32) -> (i32, i32) {
    %c0_i32 = arith.constant 0 : i32
    %c0_i32_0 = arith.constant 0 : i32
    return %arg0, %c0_i32 : i32, i32
  }
}

</mosaic_0001>

<bundles_post_ra>
// kernel: tpu_custom_call.1
= control target key start
LH: loop header
LB: loop body
LE: loop exit
PB: predicated region body
PF: predicated region fallthrough
CT: control target
= control target key end

     0   :  { %vm15_vm0 = vcmask 130048   ;;  %s251_s0 = inlined_call_operand.vmem [shape: f32[8,16], index: 0, kind: input, shape index: {}]   ;;  %s252_s1 = inlined_call_operand.vmem [shape: f32[16,8], index: 1, kind: input, shape index: {}]   ;;  %s253_s2 = inlined_call_operand.hbm [shape: f32[8,8], index: 2, kind: output, shape index: {}]  }
   0x1   :  { %v14_v0 = vld [vmem:[%s252_s1 + $0x8] sm:$0xff]  ;;  %v13_v1 = vld [vmem:[%s252_s1] sm:$0xff] }
   0x2   :  { %v12_v2 = vld [vmem:[%s251_s0] sm:$0xff]  ;;  %v33_v3 = vand.u32 4294901760, %v14_v0  ;;  %v35_v4 = vand.u32 4294901760, %v13_v1 }
   0x3   :  { %v17_v5 = vsel %vm15_vm0, %v12_v2, 0 }
   0x4   :  { %7 = vsyncpa [#allocation3], 0  ;;  %v37_v6 = vand.u32 4294901760, %v17_v5  ;;  %v61_v7 = vsub.f32 %v14_v0, %v33_v3  ;;  %34 = vmatpush.msra.mxu0 %v33_v3  ;;  %v67_v8 = vsub.f32 %v13_v1, %v35_v4  ;;  %118 = vmatpush.msra.mxu3 %v33_v3  ;;  %s223_s0 = smov [#allocation2]   ;;  %s187_s17 = sshll.u32 %s253_s2, 4  ;;  %vm178_vm1 = vcmask 64512   ;;  %s188_s17 = int_to_ptr.hbm [resolvable:$true] %s187_s17 }
   0x5   :  { %s185_s1 = sshll.u32 %s223_s0, 4  ;;  %s186_s1 = int_to_ptr.vmem [resolvable:$true] %s185_s1 }
   0x6   :  { %v38_v9 = vsub.f32 %v17_v5, %v37_v6  ;;  %93 = vmatpush.msra.mxu2 %v61_v7  ;;  %36 = vmatpush.msra.mxu0 %v35_v4  ;;  %v62_v10 = vand.u32 4294901760, %v61_v7  ;;  %v68_v11 = vand.u32 4294901760, %v67_v8 }
   0x7   :  { %120 = vmatpush.msra.mxu3 %v35_v4 }
   0x8   :  { %v39_v12 = vand.u32 4294901760, %v38_v9  ;;  %96 = vmatpush.msra.mxu2 %v67_v8  ;;  %v63_v13 = vsub.f32 %v61_v7, %v62_v10  ;;  %145 = vmatpush.msrb.mxu0 %v62_v10  ;;  %v69_v14 = vsub.f32 %v67_v8, %v68_v11 }
   0x9   :  { %99 = vmatmul.f32.vlgmr.msra.gmra.mxu2 %v38_v9 }
   0xa   :  { %v40_v15 = vsub.f32 %v38_v9, %v39_v12  ;;  %124 = vmatmul.f32.vlgmr.msra.gmra.mxu3 %v39_v12  ;;  %v64_v16 = vand.u32 4294901760, %v63_v13  ;;  %v70_v17 = vand.u32 4294901760, %v69_v14  ;;  %149 = vmatpush.msrb.mxu0 %v68_v11 }
   0xc   :  { %v41_v18 = vand.u32 4294901760, %v40_v15  ;;  %65 = vmatpush.msra.mxu1 %v64_v16 }
   0xe   :  { %42 = vmatmul.f32.vlgmr.msra.gmra.mxu0 %v41_v18  ;;  %71 = vmatpush.msra.mxu1 %v70_v17 }
   0xf   :  { %73 = vmatmul.f32.vlgmr.msra.gmra.mxu1 %v37_v6 }
  0x10   :  { %170 = vmatpush.msrb.mxu1 %v33_v3 }
  0x12   :  { %172 = vmatpush.msrb.mxu1 %v35_v4 }
  0x16   :  { %151 = vmatmul.f32.vlgmr.msrb.gmra.mxu0 %v37_v6 }
  0x17   :  { %174 = vmatmul.f32.vlgmr.msrb.gmra.mxu1 %v37_v6 }
  0x8b   :  { %v43_v19 = vpop.f32.mrf.mxu0 }
  0x8c   :  { %v74_v20 = vpop.f32.mrf.mxu1  ;;  %v100_v21 = vpop.f32.mrf.mxu2 }
  0x8d   :  { %v75_v22 = vadd.f32 %v74_v20, %v43_v19  ;;  %v125_v23 = vpop.f32.mrf.mxu3 }
  0x8f   :  { %v101_v24 = vadd.f32 %v100_v21, %v75_v22 }
  0x91   :  { %v126_v25 = vadd.f32 %v125_v23, %v101_v24 }
  0x93   :  { %v152_v26 = vpop.f32.mrf.mxu0 }
  0x94   :  { %v153_v27 = vadd.f32 %v152_v26, %v126_v25  ;;  %v175_v28 = vpop.f32.mrf.mxu1 }
  0x96   :  { %v176_v29 = vadd.f32 %v175_v28, %v153_v27 }
  0x98   :  { %179 = vst.msk [vmem:[#allocation2] sm:$0xff] %vm178_vm1, %v176_v29 }
  0x99   :  { %190 = dma.vmem_to_hbm [thread:$0]  %s186_s1, 128, %s188_s17, [#allocation3]  }
  0x9a   :  { %221 = dma.done.wait [#allocation3], 128  }
  0x9b   :  { %222 = vsyncadd [#allocation3], 4294967168 }
  0x9c   :  { %195 = vsyncpa [#allocation3], 1 }

</bundles_post_ra>
